<compile_context>
chip_gen: v7x
topology: tpu7x:2x2x1
jax: 0.10.0
libtpu: 0.0.40
codegen_flags: <defaults>
</compile_context>

<pallas_src>
import jax
import jax.numpy as jnp
from jax import lax
from jax.experimental import pallas as pl
from jax.experimental.pallas import tpu as pltpu

_LANE = 128
_SUBLANE = 8
_ROW_CHUNK = 128              # accumulator rows kept register-resident at a time
_MAX_BLOCK_BYTES = 8 << 20    # per-buffer cap for a streamed x block
_MAX_SEGW_BYTES = 8 << 20     # cap for the block-diagonal projection table


def _cdiv(a, b):
    return -(-a // b)


def _round_up(x, m):
    return _cdiv(x, m) * m


def _vmem_capacity_bytes():
    """Generation-aware VMEM capacity (128 MiB on v5e/v6e, 64 MiB on v7x)."""
    try:
        info = pltpu.get_tpu_info()
        cap = int(getattr(info, "vmem_capacity_bytes", 0) or 0)
        if cap > 0:
            return cap
    except Exception:
        pass
    return 64 * 1024 * 1024   # conservative fallback (v7x-sized)


def _select_tiles(B, C, HW, N, itemsize):
    """Pick (b_tile, tile_hw, buffering) from the device's VMEM capacity."""
    cap = _vmem_capacity_bytes()
    budget = cap // 2                       # streamed blocks + scratch + tables

    def segw_bytes(bt):
        return (bt * N) * (bt * C) * 4

    def legal(bt):
        rb = bt * C
        nrb = _cdiv(B, bt)
        if nrb > 1 and rb % _SUBLANE != 0:
            # (row_block, tile_hw) input blocks must be 8-aligned on the sublane
            # axis unless they span the whole row axis.
            return False
        if segw_bytes(bt) > _MAX_SEGW_BYTES:
            return False
        # Minimal (tile_hw = 128) double-buffered block + accumulator + table fit.
        need = 2 * rb * _LANE * itemsize + rb * _LANE * 4 + 2 * segw_bytes(bt)
        return need <= budget

    candidates = [bt for bt in range(1, B + 1) if legal(bt)]
    if not candidates:
        # TODO(synk): add a channel grid axis when a single (C, 128) slab no longer
        # fits the VMEM budget (extremely large C); fall back to one batch per block.
        candidates = [1]

    multi = [bt for bt in candidates if _cdiv(B, bt) >= 2]
    if multi:
        # >= 2 "parallel" row blocks keeps both v7x TensorCores busy; among those,
        # pick the smallest block count (largest, balanced blocks).
        min_nrb = min(_cdiv(B, bt) for bt in multi)
        b_tile = min(bt for bt in multi if _cdiv(B, bt) == min_nrb)
    else:
        b_tile = max(candidates)   # single row block (small batch)

    row_block = b_tile * C
    n_row_blocks = _cdiv(B, b_tile)
    m_out = b_tile * N

    fixed = (row_block * _LANE * 4          # f32 accumulator scratch
             + 2 * segw_bytes(b_tile)       # projection table (double-buffered)
             + 4 * m_out * 4)               # bias + output blocks (tiny)
    avail = max(budget - fixed, 2 * row_block * _LANE * itemsize)

    tile_hw = min(avail // (2 * row_block * itemsize),
                  _MAX_BLOCK_BYTES // (row_block * itemsize),
                  _round_up(HW, _LANE))
    tile_hw = max(_LANE, (tile_hw // _LANE) * _LANE)
    n_hw_blocks = _cdiv(HW, tile_hw)

    block_bytes = row_block * tile_hw * itemsize
    nbuf = 2
    if (block_bytes < (1 << 20) and n_row_blocks * n_hw_blocks >= 4
            and fixed + 3 * block_bytes <= budget):
        nbuf = 3                    # many tiny blocks: deepen pipelining

    usage = fixed + nbuf * block_bytes
    vmem_limit = int(min(int(cap * 0.9), usage + (16 << 20)))
    vmem_limit = max(vmem_limit, 8 << 20)

    return b_tile, row_block, tile_hw, nbuf, n_row_blocks, n_hw_blocks, vmem_limit


def _accumulate(x_ref, acc_ref, row_block, n_full_slabs, tail_lanes):
    """acc_ref[r, :] += per-row partial sums of the valid 128-lane slabs of x_ref."""
    for r0 in range(0, row_block, _ROW_CHUNK):
        size = min(_ROW_CHUNK, row_block - r0)
        acc = acc_ref[pl.ds(r0, size), :]                       # (size, 128) f32

        if n_full_slabs > 0:
            def body(s, a):
                off = pl.multiple_of(s * _LANE, _LANE)
                slab = x_ref[pl.ds(r0, size), pl.ds(off, _LANE)]
                return a + slab.astype(jnp.float32)

            acc = lax.fori_loop(0, n_full_slabs, body, acc,
                                unroll=min(n_full_slabs, 4))

        if tail_lanes > 0:
            # Static partial slab at the end of H*W: mask with a compile-time mask.
            slab = x_ref[pl.ds(r0, size),
                         pl.ds(n_full_slabs * _LANE, _LANE)].astype(jnp.float32)
            lane = lax.broadcasted_iota(jnp.int32, (size, _LANE), 1)
            acc = acc + jnp.where(lane < tail_lanes, slab, 0.0)

        acc_ref[pl.ds(r0, size), :] = acc


def _make_kernel(*, row_block, rows_total, m_out, full_slabs, tail_full,
                 tail_lanes, n_hw_blocks):
    mask_rows = (rows_total % row_block) != 0
    has_tail = (tail_full != full_slabs) or (tail_lanes != 0)

    def kernel(x_ref, segwt_ref, bias_ref, o_ref, acc_ref):
        # x_ref:     (row_block, tile_hw)  native dtype, rows = (batch, channel) pairs
        # segwt_ref: (row_block, m_out)    f32, kron(I_btile, W/HW)^T (block diagonal)
        # bias_ref:  (1, m_out)            f32
        # o_ref:     (1, 1, m_out)         f32 logits for this row block
        # acc_ref:   (row_block, 128)      f32 persistent partial-sum accumulator
        k = pl.program_id(1)
        last_k = n_hw_blocks - 1

        def _project_and_store():
            logits = jnp.zeros((1, m_out), jnp.float32)
            for r0 in range(0, row_block, _ROW_CHUNK):
                size = min(_ROW_CHUNK, row_block - r0)
                pooled = jnp.sum(acc_ref[pl.ds(r0, size), :], axis=-1,
                                 keepdims=True)                       # (size, 1)
                if mask_rows:
                    # Zero out-of-bounds rows of the (partial) last row block so
                    # garbage (possibly NaN/Inf) cannot leak into valid batches.
                    valid = rows_total - pl.program_id(0) * row_block
                    rid = lax.broadcasted_iota(jnp.int32, (size, 1), 0) + r0
                    pooled = jnp.where(rid < valid, pooled, 0.0)
                logits = logits + jnp.sum(
                    pooled * segwt_ref[pl.ds(r0, size), :],
                    axis=0, keepdims=True)                            # (1, m_out)
            o_ref[0] = logits + bias_ref[...]

        if n_hw_blocks == 1:
            acc_ref[...] = jnp.zeros_like(acc_ref)
            _accumulate(x_ref, acc_ref, row_block, tail_full, tail_lanes)
            _project_and_store()
        else:
            @pl.when(k == 0)
            def _init():
                acc_ref[...] = jnp.zeros_like(acc_ref)

            if has_tail:
                @pl.when(k < last_k)
                def _full_blocks():
                    _accumulate(x_ref, acc_ref, row_block, full_slabs, 0)

                @pl.when(k == last_k)
                def _tail_and_finalize():
                    _accumulate(x_ref, acc_ref, row_block, tail_full, tail_lanes)
                    _project_and_store()
            else:
                _accumulate(x_ref, acc_ref, row_block, full_slabs, 0)

                @pl.when(k == last_k)
                def _finalize():
                    _project_and_store()

    return kernel


def bcaln_cls_head_forward(x_nchw, weight, bias):
    """BCALNClsHead forward.

    Args:
      x_nchw: (B, C, H, W) NCHW input (f32 or bf16), matching the PyTorch module.
      weight: (num_classes, C) or (num_classes, C, 1, 1) Conv2d 1x1 weight.
      bias:   (num_classes,)
    Returns:
      logits with PyTorch .squeeze() semantics (unsqueeze(0) if it becomes scalar).
    """
    if isinstance(x_nchw, (list, tuple)):
        x_nchw = x_nchw[0]
    if weight.ndim == 4:
        weight = weight[:, :, 0, 0]

    B, C, H, W = x_nchw.shape
    N = weight.shape[0]
    HW = H * W
    itemsize = jnp.dtype(x_nchw.dtype).itemsize

    (b_tile, row_block, tile_hw, nbuf,
     n_row_blocks, n_hw_blocks, vmem_limit) = _select_tiles(B, C, HW, N, itemsize)

    # Packed 2D view: batch*channel on sublanes, spatial on lanes.  No padding copy.
    x2 = x_nchw.reshape(B * C, HW)

    # Fold the 1/(H*W) average and the per-batch block structure into a tiny
    # block-diagonal table: segwt[b*C + c, b'*N + n] = (b == b') * W[n, c] / (H*W).
    m_out = b_tile * N
    w_scaled = weight.astype(jnp.float32) / float(HW)                      # (N, C)
    segwt = jnp.kron(jnp.eye(b_tile, dtype=jnp.float32), w_scaled.T)       # (row_block, m_out)
    bias_row = jnp.tile(bias.astype(jnp.float32), b_tile).reshape(1, m_out)

    full_slabs = tile_hw // _LANE
    rem = HW % tile_hw
    tail_full = full_slabs if rem == 0 else rem // _LANE
    tail_lanes = 0 if rem == 0 else rem % _LANE

    kernel = _make_kernel(row_block=row_block, rows_total=B * C, m_out=m_out,
                          full_slabs=full_slabs, tail_full=tail_full,
                          tail_lanes=tail_lanes, n_hw_blocks=n_hw_blocks)

    x_spec_kwargs = {}
    if nbuf >= 3:
        x_spec_kwargs["pipeline_mode"] = pl.Buffered(nbuf)
    x_spec = pl.BlockSpec((row_block, tile_hw), lambda r, k: (r, k),
                          **x_spec_kwargs)

    cost = pl.CostEstimate(
        flops=int(B * C * HW + 2 * B * C * N),
        transcendentals=0,
        bytes_accessed=int(B * C * HW * itemsize + segwt.size * 4
                           + bias_row.size * 4 + n_row_blocks * m_out * 4))

    out = pl.pallas_call(
        kernel,
        out_shape=jax.ShapeDtypeStruct((n_row_blocks, 1, m_out), jnp.float32),
        grid_spec=pltpu.PrefetchScalarGridSpec(
            num_scalar_prefetch=0,
            grid=(n_row_blocks, n_hw_blocks),
            in_specs=[
                x_spec,
                pl.BlockSpec((row_block, m_out), lambda r, k: (0, 0)),
                pl.BlockSpec((1, m_out), lambda r, k: (0, 0)),
            ],
            out_specs=pl.BlockSpec((1, 1, m_out), lambda r, k: (r, 0, 0)),
            scratch_shapes=[pltpu.VMEM((row_block, _LANE), jnp.float32)],
        ),
        compiler_params=pltpu.CompilerParams(
            dimension_semantics=("parallel", "arbitrary"),
            vmem_limit_bytes=vmem_limit),
        cost_estimate=cost,
    )(x2, segwt, bias_row)

    logits = out.reshape(n_row_blocks * b_tile, N)[:B]       # (B, num_classes)
    # Reproduce torch .squeeze(): drop all size-1 dims; keep at least rank 1.
    logits = jnp.squeeze(logits)
    if logits.ndim == 0:
        logits = logits.reshape(1)
    return logits


if __name__ == "__main__":
    # Small shapes consistent with the module: batch=2, in_channels=4, spatial=16x16,
    # num_classes=1 (module default).
    B, C, H, W = 2, 4, 16, 16
    num_classes = 1

    key = jax.random.PRNGKey(0)
    kx, kw, kb = jax.random.split(key, 3)
    x = jax.random.normal(kx, (B, C, H, W), dtype=jnp.float32)
    weight = jax.random.normal(kw, (num_classes, C), dtype=jnp.float32) * 0.1
    bias = jax.random.normal(kb, (num_classes,), dtype=jnp.float32) * 0.1

    logits = bcaln_cls_head_forward(x, weight, bias)
    logits = jax.block_until_ready(logits)

    # Reference check in plain JAX (same math as the PyTorch module).
    pooled_ref = jnp.mean(x, axis=(2, 3))                    # (B, C)
    ref = pooled_ref @ weight.T + bias                       # (B, N)
    ref = jnp.squeeze(ref)
    if ref.ndim == 0:
        ref = ref.reshape(1)

    assert logits.shape == ref.shape, (logits.shape, ref.shape)
    assert jnp.allclose(logits, ref, atol=1e-4, rtol=1e-4), (logits, ref)

    print("KERNEL_OK")
</pallas_src>

<mosaic_0001>
module attributes {stable_mosaic.version = 11 : i64} {
  func.func @kernel(%arg0: i32, %arg1: i32, %arg2: memref<8x256xf32, #tpu.memory_space<vmem>>, %arg3: memref<8x2xf32, #tpu.memory_space<vmem>>, %arg4: memref<1x2xf32, #tpu.memory_space<vmem>>, %arg5: memref<1x1x2xf32, #tpu.memory_space<vmem>>, %arg6: memref<8x128xf32, #tpu.memory_space<vmem>>) attributes {dimension_semantics = [#tpu.dimension_semantics<parallel>, #tpu.dimension_semantics<arbitrary>], iteration_bounds = array<i64: 1, 1>, scalar_prefetch = 0 : i64, scratch_operands = 1 : i64, tpu.core_type = #tpu.core_type<tc>, window_params = [{transform_indices = @transform_0, window_bounds = array<i64: 8, 256>}, {pipeline_mode = #tpu.pipeline_mode<synchronous>, transform_indices = @transform_1, window_bounds = array<i64: 8, 2>}, {pipeline_mode = #tpu.pipeline_mode<synchronous>, transform_indices = @transform_2, window_bounds = array<i64: 1, 2>}, {transform_indices = @transform_3, window_bounds = array<i64: 1, 1, 2>}]} {
    %cst = arith.constant 0.000000e+00 : f32
    %0 = vector.broadcast %cst : f32 to vector<8x128xf32>
    %c0 = arith.constant 0 : index
    %c0_0 = arith.constant 0 : index
    %1 = vector.load %arg6[%c0, %c0_0] : memref<8x128xf32, #tpu.memory_space<vmem>>, vector<8x128xf32>
    tpu.vector_store %arg6[%c0, %c0_0], %0 {strides = array<i32>} : memref<8x128xf32, #tpu.memory_space<vmem>>, vector<8x128xf32>,
    %c0_1 = arith.constant 0 : index
    %c0_2 = arith.constant 0 : index
    %2 = vector.load %arg6[%c0_1, %c0_2] : memref<8x128xf32, #tpu.memory_space<vmem>>, vector<8x128xf32>
    %c0_i32 = arith.constant 0 : i32
    %c128_i32 = arith.constant 128 : i32
    %3 = arith.muli %c0_i32, %c128_i32 : i32
    %4 = tpu.assume_multiple %3, 128 : i32
    %c0_3 = arith.constant 0 : index
    %5 = arith.index_cast %4 : i32 to index
    %6 = vector.load %arg2[%c0_3, %5] : memref<8x256xf32, #tpu.memory_space<vmem>>, vector<8x128xf32>
    %7 = arith.addf %2, %6 : vector<8x128xf32>
    %c1_i32 = arith.constant 1 : i32
    %c128_i32_4 = arith.constant 128 : i32
    %8 = arith.muli %c1_i32, %c128_i32_4 : i32
    %9 = tpu.assume_multiple %8, 128 : i32
    %c0_5 = arith.constant 0 : index
    %10 = arith.index_cast %9 : i32 to index
    %11 = vector.load %arg2[%c0_5, %10] : memref<8x256xf32, #tpu.memory_space<vmem>>, vector<8x128xf32>
    %12 = arith.addf %7, %11 : vector<8x128xf32>
    %c2_i32 = arith.constant 2 : i32
    %c0_6 = arith.constant 0 : index
    %c0_7 = arith.constant 0 : index
    %13 = vector.load %arg6[%c0_6, %c0_7] : memref<8x128xf32, #tpu.memory_space<vmem>>, vector<8x128xf32>
    tpu.vector_store %arg6[%c0_6, %c0_7], %12 {strides = array<i32>} : memref<8x128xf32, #tpu.memory_space<vmem>>, vector<8x128xf32>,
    %cst_8 = arith.constant 0.000000e+00 : f32
    %14 = vector.broadcast %cst_8 : f32 to vector<1x2xf32>
    %c0_9 = arith.constant 0 : index
    %c0_10 = arith.constant 0 : index
    %15 = vector.load %arg6[%c0_9, %c0_10] : memref<8x128xf32, #tpu.memory_space<vmem>>, vector<8x128xf32>
    %cst_11 = arith.constant dense<0.000000e+00> : vector<8xf32>
    %16 = vector.multi_reduction <add>, %15, %cst_11 [1] : vector<8x128xf32> to vector<8xf32>
    %17 = vector.shape_cast %16 : vector<8xf32> to vector<8x1xf32>
    %c0_12 = arith.constant 0 : index
    %c0_13 = arith.constant 0 : index
    %18 = vector.load %arg3[%c0_12, %c0_13] : memref<8x2xf32, #tpu.memory_space<vmem>>, vector<8x2xf32>
    %19 = vector.broadcast %17 : vector<8x1xf32> to vector<8x2xf32>
    %20 = arith.mulf %19, %18 : vector<8x2xf32>
    %cst_14 = arith.constant dense<0.000000e+00> : vector<2xf32>
    %21 = vector.multi_reduction <add>, %20, %cst_14 [0] : vector<8x2xf32> to vector<2xf32>
    %22 = vector.shape_cast %21 : vector<2xf32> to vector<1x2xf32>
    %23 = arith.addf %14, %22 : vector<1x2xf32>
    %c0_15 = arith.constant 0 : index
    %c0_16 = arith.constant 0 : index
    %24 = vector.load %arg4[%c0_15, %c0_16] : memref<1x2xf32, #tpu.memory_space<vmem>>, vector<1x2xf32>
    %25 = arith.addf %23, %24 : vector<1x2xf32>
    %c0_17 = arith.constant 0 : index
    %c0_18 = arith.constant 0 : index
    %c0_19 = arith.constant 0 : index
    %26 = vector.load %arg5[%c0_17, %c0_18, %c0_19] : memref<1x1x2xf32, #tpu.memory_space<vmem>>, vector<1x1x2xf32>
    %27 = vector.shape_cast %26 : vector<1x1x2xf32> to vector<1x2xf32>
    %28 = vector.shape_cast %25 : vector<1x2xf32> to vector<1x1x2xf32>
    tpu.vector_store %arg5[%c0_17, %c0_18, %c0_19], %28 {strides = array<i32>} : memref<1x1x2xf32, #tpu.memory_space<vmem>>, vector<1x1x2xf32>,
    return
  }
  func.func @transform_0(%arg0: i32, %arg1: i32) -> (i32, i32) {
    %c0_i32 = arith.constant 0 : i32
    return %arg0, %arg1 : i32, i32
  }
  func.func @transform_1(%arg0: i32, %arg1: i32) -> (i32, i32) {
    %c0_i32 = arith.constant 0 : i32
    %c0_i32_0 = arith.constant 0 : i32
    %c0_i32_1 = arith.constant 0 : i32
    return %c0_i32, %c0_i32_0 : i32, i32
  }
  func.func @transform_2(%arg0: i32, %arg1: i32) -> (i32, i32) {
    %c0_i32 = arith.constant 0 : i32
    %c0_i32_0 = arith.constant 0 : i32
    %c0_i32_1 = arith.constant 0 : i32
    return %c0_i32, %c0_i32_0 : i32, i32
  }
  func.func @transform_3(%arg0: i32, %arg1: i32) -> (i32, i32, i32) {
    %c0_i32 = arith.constant 0 : i32
    %c0_i32_0 = arith.constant 0 : i32
    %c0_i32_1 = arith.constant 0 : i32
    return %arg0, %c0_i32, %c0_i32_0 : i32, i32, i32
  }
}

</mosaic_0001>

<bundles_post_ra>
// kernel: tpu_custom_call.1
= control target key start
LH: loop header
LB: loop body
LE: loop exit
PB: predicated region body
PF: predicated region fallthrough
CT: control target
= control target key end

     0   :  { %8 = vsyncpa [#allocation4], 0  ;;  %s170_s0 = inlined_call_operand.hbm [shape: f32[8,256], index: 0, kind: input, shape index: {}]   ;;  %s171_s1 = inlined_call_operand.vmem [shape: f32[8,2], index: 1, kind: input, shape index: {}]   ;;  %s172_s2 = inlined_call_operand.vmem [shape: f32[1,2], index: 2, kind: input, shape index: {}]   ;;  %s173_s3 = inlined_call_operand.hbm [shape: f32[1,1,2], index: 3, kind: output, shape index: {}]  }
   0x1   :  { %9 = vsyncpa [#allocation5], 0  ;;  %s118_s12 = smov [#allocation3]   ;;  %s70_s16 = scalar_lea.hbm %s170_s0, 256 }
   0x2   :  { %s16_s13 = sshll.u32 %s118_s12, 4  ;;  %p71_p0 = scmp.ne.s32.totalorder %s170_s0, %s70_s16  ;;  %s17_s13 = int_to_ptr.vmem [resolvable:$true] %s16_s13 }
   0x3   :  { %p74_p1 = scmp.lt.u32.totalorder %s70_s16, %s170_s0 }
   0x5   :  { %p76_p2 = pnand %p74_p1, %p71_p0 }
   0x7   :  { %79 = shalt.err (!%p76_p2)
}
   0x8   :  { %s80_s21 = scalar_lea.vmem %s17_s13, 256  ;;  %p85_p4 = scmp.lt.s32.totalorder %s17_s13, %s17_s13 }
   0x9   :  { %p81_p3 = scmp.ne.s32.totalorder %s17_s13, %s80_s21  ;;  %p86_p5 = scmp.lt.s32.totalorder %s80_s21, %s80_s21 }
   0xb   :  { %p87_p6 = por %p86_p5, %p85_p4 }
   0xd   :  { %p88_p7 = pnand %p87_p6, %p81_p3 }
   0xf   :  { %91 = shalt.err (!%p88_p7)
}
  0x10   :  { %19 = dma.hbm_to_vmem [thread:$0]  %s170_s0, 256, %s17_s13, [#allocation4]  }
  0x11   :  { %114 = dma.done.wait [#allocation4], 256  }
  0x12   :  { %115 = vsyncadd [#allocation4], 4294967040  ;;  %v29_v0 = vld [vmem:[#allocation3] sm:$0xff]  ;;  %v32_v1 = vld [vmem:[#allocation3 + $0x8] sm:$0xff]  ;;  %vm40_vm0 = vcmask 15360   ;;  %s119_s27 = smov [#allocation6]  }
  0x13   :  { %v33_v2 = vadd.f32 %v32_v1, %v29_v0  ;;  %v38_v3 = vld [vmem:[%s171_s1] sm:$0xff]  ;;  %s59_s28 = sshll.u32 %s119_s27, 4  ;;  %vm51_vm1 = vcmask 8192   ;;  %s60_s28 = int_to_ptr.vmem [resolvable:$true] %s59_s28 }
  0x14   :  { %v49_v12 = vld [vmem:[%s172_s2] sm:$0x1]  ;;  %s92_s1 = scalar_lea.vmem %s60_s28, 16  ;;  %s96_s29 = scalar_lea.vmem %s60_s28, 32 }
  0x15   :  { %36 = vadd.xlane.f32.xlu0 %v33_v2  ;;  %p93_p8 = scmp.ne.s32.totalorder %s60_s28, %s92_s1  ;;  %p97_p9 = scmp.lt.s32.totalorder %s60_s28, %s60_s28 }
  0x16   :  { %p98_p10 = scmp.lt.s32.totalorder %s96_s29, %s92_s1 }
  0x18   :  { %p99_p11 = por %p98_p10, %p97_p9 }
  0x1a   :  { %p100_p12 = pnand %p99_p11, %p93_p8 }
  0xa2   :  { %v37_v4 = vpop.xlane.xlu0 %36 }
  0xa3   :  { %v39_v5 = vmul.f32 %v38_v3, %v37_v4 }
  0xa5   :  { %v41_v6 = vsel %vm40_vm0, %v39_v5, 0.0 }
  0xa6   :  { %v42_v7 = vrot.slane %v41_v6, 4 }
  0xa8   :  { %v43_v8 = vadd.f32 %v42_v7, %v41_v6 }
  0xaa   :  { %v44_v9 = vrot.slane %v43_v8, 2 }
  0xac   :  { %v45_v10 = vadd.f32 %v44_v9, %v43_v8 }
  0xae   :  { %v46_v11 = vrot.slane %v45_v10, 1 }
  0xb0   :  { %v47_v13 = vadd.f32 %v46_v11, %v45_v10 }
  0xb2   :  { %v50_v14 = vadd.f32 %v49_v12, %v47_v13 }
  0xb4   :  { %52 = vst.msk [vmem:[#allocation6] sm:$0x1] %vm51_vm1, %v50_v14 }
  0xb5   :  { %103 = shalt.err (!%p100_p12)
}
  0xb6   :  { %s104_s5 = scalar_lea.hbm %s173_s3, 16 }
  0xb7   :  { %p105_p13 = scmp.ne.s32.totalorder %s173_s3, %s104_s5  ;;  %p108_p0 = scmp.lt.u32.totalorder %s104_s5, %s173_s3 }
  0xb9   :  { %p110_p1 = pnand %p108_p0, %p105_p13 }
  0xbb   :  { %113 = shalt.err (!%p110_p1)
}
  0xbc   :  { %62 = dma.vmem_to_hbm [thread:$0]  %s60_s28, 16, %s173_s3, [#allocation5]  }
  0xbd   :  { %116 = dma.done.wait [#allocation5], 16  }
  0xbe   :  { %117 = vsyncadd [#allocation5], 4294967280 }
  0xbf   :  { %66 = vsyncpa [#allocation4], 1 }
  0xc0   :  { %67 = vsyncpa [#allocation5], 1 }

</bundles_post_ra>
